<compile_context>
chip_gen: v6e
topology: v6e:2x2x1
jax: 0.10.0
libtpu: 0.0.40
codegen_flags: <defaults>
</compile_context>

<pallas_src>
import functools

import jax
import jax.numpy as jnp
from jax.experimental import pallas as pl
from jax.experimental.pallas import tpu as pltpu

_SUBLANE = 8  # f32 sublane count (second-to-last dim granularity)


def _round_up(x, m):
    return ((x + m - 1) // m) * m


def _ising_kernel(x_ref, wt_ref, b_ref, o_ref, *, approx_recip):
    # x_ref:  [bb, in_dim]     streamed batch tile (native dtype, e.g. bf16)
    # wt_ref: [in_dim, hidden] pre-transposed weight, VMEM-resident
    # b_ref:  [1, hidden]      f32 bias, VMEM-resident
    # o_ref:  [bb, hidden]     output tile (true hidden extent, no padding)
    z = jnp.dot(x_ref[...], wt_ref[...],
                preferred_element_type=jnp.float32)        # MXU, f32 acc
    z = z + b_ref[...]                                      # VPU, f32
    e = jnp.exp(-z)                                         # EUP
    sig = pl.reciprocal(1.0 + e, approx=approx_recip)       # 1/(1+exp(-z))
    o_ref[...] = sig.astype(o_ref.dtype)


def ising_boltzmann_forward(x, weight, bias, *, block_b=2048, out_dtype=None,
                            approx_sigmoid=False):
    """sigmoid(x @ weight.T + bias).

    x:      [B, input_size]   consumed at its native shape & dtype (f32/bf16)
    weight: [hidden, input_size]  (PyTorch nn.Linear layout)
    bias:   [hidden]
    out_dtype: defaults to x.dtype (so bf16 in -> bf16 out, halving writes).
    approx_sigmoid: use the EUP approx reciprocal in the epilogue.
    """
    B, in_dim = x.shape
    hidden = weight.shape[0]
    if out_dtype is None:
        out_dtype = x.dtype

    # Tiny host-side prep: only the <1 KiB weight/bias are touched here.
    wt = weight.T.astype(x.dtype)                       # [in_dim, hidden]
    b2 = bias.astype(jnp.float32).reshape(1, hidden)    # [1, hidden]

    # Batch tile: aim for an even number of balanced tiles (2*k) so both v7x
    # TensorCores get work; multiple of 8 sublanes; capped at block_b rows.
    k = 1
    bb = _round_up(pl.cdiv(B, 2 * k), _SUBLANE)
    while bb > block_b:
        k += 1
        bb = _round_up(pl.cdiv(B, 2 * k), _SUBLANE)
    bb = max(_SUBLANE, bb)
    grid_b = pl.cdiv(B, bb)   # edge block (if any) is padded/masked by Pallas

    kernel = functools.partial(_ising_kernel, approx_recip=approx_sigmoid)

    return pl.pallas_call(
        kernel,
        out_shape=jax.ShapeDtypeStruct((B, hidden), out_dtype),
        grid_spec=pltpu.PrefetchScalarGridSpec(
            num_scalar_prefetch=0,
            grid=(grid_b,),
            in_specs=[
                # x streams through the pipeline, tiled over batch only.
                pl.BlockSpec((bb, in_dim), lambda i: (i, 0)),
                # Weight / bias: whole-array VMEM-resident, never re-DMA'd.
                pl.BlockSpec(memory_space=pltpu.MemorySpace.VMEM),
                pl.BlockSpec(memory_space=pltpu.MemorySpace.VMEM),
            ],
            out_specs=pl.BlockSpec((bb, hidden), lambda i: (i, 0)),
        ),
        compiler_params=pltpu.CompilerParams(
            # Independent batch tiles -> shard across TensorCores on v7x.
            dimension_semantics=("parallel",),
        ),
    )(x, wt, b2)


if __name__ == "__main__":
    input_size = 10
    hidden_size = 5
    batch = 8

    key = jax.random.PRNGKey(0)
    kx, kw, kb, kx2 = jax.random.split(key, 4)

    # nn.Linear default init: uniform(-1/sqrt(in), 1/sqrt(in)).
    bound = 1.0 / jnp.sqrt(jnp.float32(input_size))
    weight = jax.random.uniform(kw, (hidden_size, input_size), jnp.float32,
                                minval=-bound, maxval=bound)
    bias = jax.random.uniform(kb, (hidden_size,), jnp.float32,
                              minval=-bound, maxval=bound)
    x = jax.random.normal(kx, (batch, input_size), jnp.float32)

    def ref_fn(xx):
        return jax.nn.sigmoid(xx @ weight.T + bias)

    # 1) Small-batch f32 path (the module's spec shapes).
    out = jax.block_until_ready(ising_boltzmann_forward(x, weight, bias))
    assert out.shape == (batch, hidden_size)
    assert out.dtype == jnp.float32
    assert jnp.allclose(out, ref_fn(x), atol=1e-5, rtol=1e-5)

    # 2) Larger, non-tile-aligned batch: 2 balanced tiles, partial edge block.
    x_big = jax.random.normal(kx2, (1000, input_size), jnp.float32)
    out_big = jax.block_until_ready(ising_boltzmann_forward(x_big, weight, bias))
    assert out_big.shape == (1000, hidden_size)
    assert jnp.allclose(out_big, ref_fn(x_big), atol=1e-5, rtol=1e-5)

    # 3) bf16 I/O path: x arrives in bf16 (no wrapper cast pass), output bf16,
    #    f32 accumulate / bias / sigmoid in-kernel.
    x_bf16 = x_big.astype(jnp.bfloat16)
    out_bf16 = jax.block_until_ready(
        ising_boltzmann_forward(x_bf16, weight, bias))
    assert out_bf16.dtype == jnp.bfloat16
    assert jnp.allclose(out_bf16.astype(jnp.float32), ref_fn(x_big),
                        atol=3e-2, rtol=3e-2)

    # 4) Approx-reciprocal epilogue variant (EUP offload), relaxed tolerance.
    out_apx = jax.block_until_ready(
        ising_boltzmann_forward(x_big, weight, bias, approx_sigmoid=True))
    assert jnp.allclose(out_apx, ref_fn(x_big), atol=5e-3, rtol=5e-3)

    print("KERNEL_OK")
</pallas_src>

<mosaic_0001>
module attributes {stable_mosaic.version = 11 : i64} {
  func.func @_ising_kernel(%arg0: i32, %arg1: memref<8x10xf32, #tpu.memory_space<vmem>>, %arg2: memref<10x5xf32, #tpu.memory_space<vmem>>, %arg3: memref<1x5xf32, #tpu.memory_space<vmem>>, %arg4: memref<8x5xf32, #tpu.memory_space<vmem>>) attributes {dimension_semantics = [#tpu.dimension_semantics<parallel>], iteration_bounds = array<i64: 1>, scalar_prefetch = 0 : i64, scratch_operands = 0 : i64, tpu.core_type = #tpu.core_type<tc>, window_params = [{transform_indices = @transform_0, window_bounds = array<i64: 8, 10>}, {pipeline_mode = #tpu.pipeline_mode<synchronous>, transform_indices = @transform_1, window_bounds = array<i64: 10, 5>}, {pipeline_mode = #tpu.pipeline_mode<synchronous>, transform_indices = @transform_2, window_bounds = array<i64: 1, 5>}, {transform_indices = @transform_3, window_bounds = array<i64: 8, 5>}]} {
    %c0 = arith.constant 0 : index
    %c0_0 = arith.constant 0 : index
    %0 = vector.load %arg1[%c0, %c0_0] : memref<8x10xf32, #tpu.memory_space<vmem>>, vector<8x10xf32>
    %c0_1 = arith.constant 0 : index
    %c0_2 = arith.constant 0 : index
    %1 = vector.load %arg2[%c0_1, %c0_2] : memref<10x5xf32, #tpu.memory_space<vmem>>, vector<10x5xf32>
    %cst = arith.constant dense<0.000000e+00> : vector<8x5xf32>
    %2 = tpu.matmul %0, %1, %cst {dimension_numbers = #tpu.dot_dimension_numbers<[1], [0], [0], [1], [0, 0, 1, 1], [], []>} : vector<8x10xf32>, vector<10x5xf32>, vector<8x5xf32> -> vector<8x5xf32>
    %c0_3 = arith.constant 0 : index
    %c0_4 = arith.constant 0 : index
    %3 = vector.load %arg3[%c0_3, %c0_4] : memref<1x5xf32, #tpu.memory_space<vmem>>, vector<1x5xf32>
    %4 = vector.broadcast %3 : vector<1x5xf32> to vector<8x5xf32>
    %5 = arith.addf %2, %4 : vector<8x5xf32>
    %cst_5 = arith.constant 0.000000e+00 : f32
    %6 = vector.broadcast %cst_5 : f32 to vector<8x5xf32>
    %7 = arith.subf %6, %5 : vector<8x5xf32>
    %8 = math.exp %7 : vector<8x5xf32>
    %cst_6 = arith.constant 1.000000e+00 : f32
    %9 = vector.broadcast %cst_6 : f32 to vector<8x5xf32>
    %10 = arith.addf %9, %8 : vector<8x5xf32>
    %11 = tpu.reciprocal %10 : vector<8x5xf32> -> vector<8x5xf32>
    %c0_7 = arith.constant 0 : index
    %c0_8 = arith.constant 0 : index
    %12 = vector.load %arg4[%c0_7, %c0_8] : memref<8x5xf32, #tpu.memory_space<vmem>>, vector<8x5xf32>
    tpu.vector_store %arg4[%c0_7, %c0_8], %11 {strides = array<i32>} : memref<8x5xf32, #tpu.memory_space<vmem>>, vector<8x5xf32>,
    return
  }
  func.func @transform_0(%arg0: i32) -> (i32, i32) {
    %c0_i32 = arith.constant 0 : i32
    %c0_i32_0 = arith.constant 0 : i32
    return %arg0, %c0_i32 : i32, i32
  }
  func.func @transform_1(%arg0: i32) -> (i32, i32) {
    %c0_i32 = arith.constant 0 : i32
    %c0_i32_0 = arith.constant 0 : i32
    %c0_i32_1 = arith.constant 0 : i32
    return %c0_i32, %c0_i32_0 : i32, i32
  }
  func.func @transform_2(%arg0: i32) -> (i32, i32) {
    %c0_i32 = arith.constant 0 : i32
    %c0_i32_0 = arith.constant 0 : i32
    %c0_i32_1 = arith.constant 0 : i32
    return %c0_i32, %c0_i32_0 : i32, i32
  }
  func.func @transform_3(%arg0: i32) -> (i32, i32) {
    %c0_i32 = arith.constant 0 : i32
    %c0_i32_0 = arith.constant 0 : i32
    return %arg0, %c0_i32 : i32, i32
  }
}

</mosaic_0001>

<bundles_post_ra>
// kernel: tpu_custom_call.1
= control target key start
LH: loop header
LB: loop body
LE: loop exit
PB: predicated region body
PF: predicated region fallthrough
CT: control target
= control target key end

     0   :  { %vm29_vm0 = vcmask 1041408   ;;  %v166_v1 = vmov 0.0   ;;  %vm167_vm1 = vmmov 0   ;;  %s204_s0 = inlined_call_operand.vmem [shape: f32[8,10], index: 0, kind: input, shape index: {}]   ;;  %s205_s1 = inlined_call_operand.vmem [shape: f32[10,5], index: 1, kind: input, shape index: {}]   ;;  %s206_s2 = inlined_call_operand.vmem [shape: f32[1,5], index: 2, kind: input, shape index: {}]   ;;  %s207_s3 = inlined_call_operand.hbm [shape: f32[8,5], index: 3, kind: output, shape index: {}]  }
   0x1   :  { %v17_v0 = vld [vmem:[%s205_s1 + $0x8] sm:$0x3]  ;;  %130 = vmatprep.subr.mxu0 %v166_v1  ;;  %v16_v2 = vld [vmem:[%s205_s1] sm:$0xff]  ;;  %134 = vmatprep.mubr.msk.f32.mxu0 %vm167_vm1, %v166_v1 }
   0x2   :  { %8 = vsyncpa [#allocation3], 0  ;;  %131 = vmatpush3.msk.msra.mxu0 %vm29_vm0, %v17_v0  ;;  %v15_v3 = vld [vmem:[%s204_s0] sm:$0xff]  ;;  %vm25_vm2 = vcmask 80896   ;;  %s168_s1 = smov [#allocation2]   ;;  %vm108_vm3 = vcmask 39936  }
   0x3   :  { %132 = vmatprep.subr.mxu0 %v166_v1  ;;  %v124_v4 = vld [vmem:[%s206_s2] ss:$0 sm:$0xff]  ;;  %s116_s20 = sshll.u32 %s168_s1, 4  ;;  %s117_s20 = int_to_ptr.vmem [resolvable:$true] %s116_s20 }
   0x4   :  { %133 = vmatpush3.msra.mxu0 %v16_v2  ;;  %s144_s0 = scalar_lea.vmem %s117_s20, 128  ;;  %p149_p1 = scmp.lt.s32.totalorder %s117_s20, %s117_s20 }
   0x5   :  { %135 = vmatmul.mubr.msk.f32.vlgmr.msra.gmra.mxu0 %vm25_vm2, %v15_v3  ;;  %p145_p0 = scmp.ne.s32.totalorder %s117_s20, %s144_s0  ;;  %p150_p2 = scmp.lt.s32.totalorder %s144_s0, %s144_s0 }
   0x7   :  { %p151_p3 = por %p150_p2, %p149_p1 }
   0x9   :  { %p152_p4 = pnand %p151_p3, %p145_p0 }
  0xc5   :  { %v99_v5 = vpop.f32.mrf.mxu0 }
  0xc6   :  { %v100_v6 = vadd.f32 %v124_v4, %v99_v5 }
  0xc7   :  { %v136_v7 = vpop.f32.mrf.mxu0 }
  0xc8   :  { %v103_v8 = vsub.f32 0.0, %v100_v6 }
  0xca   :  { %v104_v9 = vmul.f32 1.442695, %v103_v8 }
  0xcc   :  { %140 = vpow2.f32 %v104_v9 }
  0xd9   :  { %v141_v10 = vpop.eup %140 }
  0xda   :  { %v106_v11 = vadd.f32 1.0, %v141_v10 }
  0xdc   :  { %142 = vrcp.f32 %v106_v11 }
  0xe9   :  { %v143_v12 = vpop.eup %142 }
  0xea   :  { %109 = vst.msk [vmem:[#allocation2] sm:$0xff] %vm108_vm3, %v143_v12 }
  0xeb   :  { %155 = shalt.err (!%p152_p4)
}
  0xec   :  { %119 = dma.vmem_to_hbm [thread:$0]  %s117_s20, 128, %s207_s3, [#allocation3]  }
  0xed   :  { %164 = dma.done.wait [#allocation3], 128  }
  0xee   :  { %165 = vsyncadd [#allocation3], 4294967168 }
  0xef   :  { %123 = vsyncpa [#allocation3], 1 }

</bundles_post_ra>
